<compile_context>
chip_gen: v6e
topology: v6e:2x2x1
jax: 0.10.0
libtpu: 0.0.40
codegen_flags: <defaults>
</compile_context>

<pallas_src>
import jax
import jax.numpy as jnp
from jax.experimental import pallas as pl
from jax.experimental.pallas import tpu as pltpu


def value_net_kernel(x_t_ref, w1_t_ref, b1_ref, w2p_ref, b2_ref, o_ref):
    # Layer 1 on the MXU: (hidden, obs_dim) @ (obs_dim, tile_b) -> (hidden, tile_b),
    # f32 accumulation regardless of the (bf16) input dtype.
    h = jnp.dot(w1_t_ref[...], x_t_ref[...], preferred_element_type=jnp.float32)
    # Bias (hidden, 1) broadcasts across lanes; ReLU on the VPU in f32.
    h = jnp.maximum(h + b1_ref[...], 0.0)                               # (hidden, tile_b)

    # Layer 2 as a plain ((1,),(0,)) contraction: (8, hidden) @ (hidden, tile_b).
    # h already has hidden on sublanes, so no XLU transpose is inserted.  Row 0 of
    # w2p is the real weight row; rows 1..7 are zero padding for an (8,128) MXU tile.
    # TODO(synk): if a v7x bundle dump shows vmatmul cadence binding, replace this
    # matmul with a VPU multiply + sublane reduction to drop the 8x-padded MXU work.
    out = jnp.dot(w2p_ref[...], h.astype(w2p_ref.dtype),
                  preferred_element_type=jnp.float32)                   # (8, tile_b)
    o_ref[...] = (out[0:1, :] + b2_ref[0]).astype(o_ref.dtype)          # lane-dense (1, tile_b)


def value_network_forward(x, w1, b1, w2, b2, *, tile_b=4096, compute_dtype=jnp.bfloat16):
    """x: (B, obs_dim); w1: (obs_dim, 128); b1: (128,)/(1,128); w2: (128,1); b2 scalar-ish.

    Returns (B, 1) float32, matching nn.Sequential(Linear(obs,128), ReLU, Linear(128,1)).
    """
    B, obs_dim = x.shape
    hidden = w1.shape[1]

    # Feature-major x so batch lies on the lane axis (dense vregs, no 4x lane-pad DMA).
    # NOTE: ideally the caller produces x feature-major so this transpose vanishes.
    x_t = jnp.asarray(x, compute_dtype).T                           # (obs_dim, B)
    w1_t = jnp.asarray(w1, compute_dtype).T                         # (hidden, obs_dim)
    b1_c = jnp.asarray(b1, jnp.float32).reshape(hidden, 1)          # broadcast over lanes
    w2_row = jnp.asarray(w2, compute_dtype).reshape(1, hidden)
    w2p = jnp.concatenate([w2_row, jnp.zeros((7, hidden), w2_row.dtype)], axis=0)  # (8, hidden)
    b2s = jnp.asarray(b2, jnp.float32).reshape(1)                   # scalar -> SMEM

    # Batch tiling along the lane axis.  Ragged last tiles are handled by Pallas block
    # padding (OOB input columns are garbage, OOB output writes are dropped) -- no
    # jnp.pad copy of x.  Large tiles amortize the ~0.35us per-grid-step overhead.
    if B <= tile_b:
        tile_b = B
        num_tiles = 1
    else:
        assert tile_b % 128 == 0, "tile_b must be a multiple of 128 for multi-tile runs"
        num_tiles = pl.cdiv(B, tile_b)

    itemsize = jnp.dtype(compute_dtype).itemsize
    cost = pl.CostEstimate(
        flops=2 * B * hidden * (obs_dim + 8),
        transcendentals=0,
        bytes_accessed=(x_t.size + w1_t.size + w2p.size) * itemsize
        + (b1_c.size + 1 + B) * 4,
    )

    out = pl.pallas_call(
        value_net_kernel,
        out_shape=jax.ShapeDtypeStruct((1, B), jnp.float32),
        grid=(num_tiles,),
        in_specs=[
            pl.BlockSpec((obs_dim, tile_b), lambda i: (0, i)),      # x^T: batch-tiled, lane-dense
            pl.BlockSpec((hidden, obs_dim), lambda i: (0, 0)),      # w1^T: VMEM-resident
            pl.BlockSpec((hidden, 1), lambda i: (0, 0)),            # b1 column: VMEM-resident
            pl.BlockSpec((8, hidden), lambda i: (0, 0)),            # w2 (8-row padded): resident
            pl.BlockSpec(memory_space=pltpu.MemorySpace.SMEM),      # b2: scalar in SMEM
        ],
        out_specs=pl.BlockSpec((1, tile_b), lambda i: (0, i)),      # (1, B) lane-dense values
        compiler_params=pltpu.CompilerParams(
            dimension_semantics=("parallel",),                      # megacore sharding on v7x
        ),
        cost_estimate=cost,
    )(x_t, w1_t, b1_c, w2p, b2s)

    return out.reshape(B, 1)                                        # (1,B) -> (B,1), free reshape


def init_params(key, obs_dim, hidden=128):
    # Deterministic init mimicking nn.Linear's uniform(-1/sqrt(fan_in), 1/sqrt(fan_in)).
    k1, k2, k3, k4 = jax.random.split(key, 4)
    lim1 = 1.0 / jnp.sqrt(jnp.float32(obs_dim))
    lim2 = 1.0 / jnp.sqrt(jnp.float32(hidden))
    w1 = jax.random.uniform(k1, (obs_dim, hidden), jnp.float32, -lim1, lim1)
    b1 = jax.random.uniform(k2, (1, hidden), jnp.float32, -lim1, lim1)
    w2 = jax.random.uniform(k3, (hidden, 1), jnp.float32, -lim2, lim2)
    b2 = jax.random.uniform(k4, (1, 1), jnp.float32, -lim2, lim2)
    return w1, b1, w2, b2


if __name__ == "__main__":
    key = jax.random.PRNGKey(0)
    kx, kp = jax.random.split(key)

    B, obs_dim = 256, 32
    x = jax.random.normal(kx, (B, obs_dim), jnp.float32)
    w1, b1, w2, b2 = init_params(kp, obs_dim)
    ref = jnp.maximum(x @ w1 + b1, 0.0) @ w2 + b2                   # f32 reference

    # 1) Multi-tile bf16 path (grid of 2 batch tiles).
    out = jax.block_until_ready(value_network_forward(x, w1, b1, w2, b2, tile_b=128))
    assert out.shape == (B, 1)
    assert jnp.allclose(out, ref, atol=5e-2, rtol=5e-2)             # bf16 inputs, f32 accumulate

    # 2) Ragged batch (B=200, tile_b=128): last block handled by Pallas masking, no pad.
    out_r = jax.block_until_ready(value_network_forward(x[:200], w1, b1, w2, b2, tile_b=128))
    assert out_r.shape == (200, 1)
    assert jnp.allclose(out_r, ref[:200], atol=5e-2, rtol=5e-2)

    # 3) Single-tile odd batch in full f32 (tight tolerance).
    out_s = jax.block_until_ready(
        value_network_forward(x[:10], w1, b1, w2, b2, compute_dtype=jnp.float32))
    assert out_s.shape == (10, 1)
    assert jnp.allclose(out_s, ref[:10], atol=1e-5, rtol=1e-5)

    print("KERNEL_OK")
</pallas_src>

<mosaic_0001>
module attributes {stable_mosaic.version = 11 : i64} {
  func.func @value_net_kernel(%arg0: i32, %arg1: memref<32x128xbf16, #tpu.memory_space<vmem>>, %arg2: memref<128x32xbf16, #tpu.memory_space<vmem>>, %arg3: memref<128x1xf32, #tpu.memory_space<vmem>>, %arg4: memref<8x128xbf16, #tpu.memory_space<vmem>>, %arg5: memref<1xf32, #tpu.memory_space<smem>>, %arg6: memref<1x128xf32, #tpu.memory_space<vmem>>) attributes {dimension_semantics = [#tpu.dimension_semantics<parallel>], iteration_bounds = array<i64: 2>, scalar_prefetch = 0 : i64, scratch_operands = 0 : i64, tpu.core_type = #tpu.core_type<tc>, window_params = [{transform_indices = @transform_0, window_bounds = array<i64: 32, 128>}, {pipeline_mode = #tpu.pipeline_mode<synchronous>, transform_indices = @transform_1, window_bounds = array<i64: 128, 32>}, {pipeline_mode = #tpu.pipeline_mode<synchronous>, transform_indices = @transform_2, window_bounds = array<i64: 128, 1>}, {pipeline_mode = #tpu.pipeline_mode<synchronous>, transform_indices = @transform_3, window_bounds = array<i64: 8, 128>}, {transform_indices = @transform_4, window_bounds = array<i64: 1>}, {transform_indices = @transform_5, window_bounds = array<i64: 1, 128>}]} {
    %c0 = arith.constant 0 : index
    %c0_0 = arith.constant 0 : index
    %0 = vector.load %arg2[%c0, %c0_0] : memref<128x32xbf16, #tpu.memory_space<vmem>>, vector<128x32xbf16>
    %c0_1 = arith.constant 0 : index
    %c0_2 = arith.constant 0 : index
    %1 = vector.load %arg1[%c0_1, %c0_2] : memref<32x128xbf16, #tpu.memory_space<vmem>>, vector<32x128xbf16>
    %cst = arith.constant dense<0.000000e+00> : vector<128x128xf32>
    %2 = tpu.matmul %0, %1, %cst {dimension_numbers = #tpu.dot_dimension_numbers<[1], [0], [0], [1], [0, 0, 1, 1], [], []>} : vector<128x32xbf16>, vector<32x128xbf16>, vector<128x128xf32> -> vector<128x128xf32>
    %c0_3 = arith.constant 0 : index
    %c0_4 = arith.constant 0 : index
    %3 = vector.load %arg3[%c0_3, %c0_4] : memref<128x1xf32, #tpu.memory_space<vmem>>, vector<128x1xf32>
    %4 = vector.broadcast %3 : vector<128x1xf32> to vector<128x128xf32>
    %5 = arith.addf %2, %4 : vector<128x128xf32>
    %cst_5 = arith.constant 0.000000e+00 : f32
    %6 = vector.broadcast %cst_5 : f32 to vector<128x128xf32>
    %7 = arith.maximumf %5, %6 : vector<128x128xf32>
    %c0_6 = arith.constant 0 : index
    %c0_7 = arith.constant 0 : index
    %8 = vector.load %arg4[%c0_6, %c0_7] : memref<8x128xbf16, #tpu.memory_space<vmem>>, vector<8x128xbf16>
    %9 = arith.truncf %7 : vector<128x128xf32> to vector<128x128xbf16>
    %cst_8 = arith.constant dense<0.000000e+00> : vector<8x128xf32>
    %10 = tpu.matmul %8, %9, %cst_8 {dimension_numbers = #tpu.dot_dimension_numbers<[1], [0], [0], [1], [0, 0, 1, 1], [], []>} : vector<8x128xbf16>, vector<128x128xbf16>, vector<8x128xf32> -> vector<8x128xf32>
    %11 = vector.extract_strided_slice %10 {offsets = [0, 0], sizes = [1, 128], strides = [1, 1]} : vector<8x128xf32> to vector<1x128xf32>
    %c0_9 = arith.constant 0 : index
    %12 = memref.load %arg5[%c0_9] : memref<1xf32, #tpu.memory_space<smem>>
    %13 = vector.broadcast %12 : f32 to vector<1x128xf32>
    %14 = arith.addf %11, %13 : vector<1x128xf32>
    %c0_10 = arith.constant 0 : index
    %c0_11 = arith.constant 0 : index
    %15 = vector.load %arg6[%c0_10, %c0_11] : memref<1x128xf32, #tpu.memory_space<vmem>>, vector<1x128xf32>
    tpu.vector_store %arg6[%c0_10, %c0_11], %14 {strides = array<i32>} : memref<1x128xf32, #tpu.memory_space<vmem>>, vector<1x128xf32>,
    return
  }
  func.func @transform_0(%arg0: i32) -> (i32, i32) {
    %c0_i32 = arith.constant 0 : i32
    %c0_i32_0 = arith.constant 0 : i32
    return %c0_i32, %arg0 : i32, i32
  }
  func.func @transform_1(%arg0: i32) -> (i32, i32) {
    %c0_i32 = arith.constant 0 : i32
    %c0_i32_0 = arith.constant 0 : i32
    %c0_i32_1 = arith.constant 0 : i32
    return %c0_i32, %c0_i32_0 : i32, i32
  }
  func.func @transform_2(%arg0: i32) -> (i32, i32) {
    %c0_i32 = arith.constant 0 : i32
    %c0_i32_0 = arith.constant 0 : i32
    %c0_i32_1 = arith.constant 0 : i32
    return %c0_i32, %c0_i32_0 : i32, i32
  }
  func.func @transform_3(%arg0: i32) -> (i32, i32) {
    %c0_i32 = arith.constant 0 : i32
    %c0_i32_0 = arith.constant 0 : i32
    %c0_i32_1 = arith.constant 0 : i32
    return %c0_i32, %c0_i32_0 : i32, i32
  }
  func.func @transform_4(%arg0: i32) -> i32 {
    %c0_i32 = arith.constant 0 : i32
    %c0_i32_0 = arith.constant 0 : i32
    return %c0_i32 : i32
  }
  func.func @transform_5(%arg0: i32) -> (i32, i32) {
    %c0_i32 = arith.constant 0 : i32
    %c0_i32_0 = arith.constant 0 : i32
    return %c0_i32, %arg0 : i32, i32
  }
}

</mosaic_0001>

<bundles_post_ra>
// kernel: tpu_custom_call.1
= control target key start
LH: loop header
LB: loop body
LE: loop exit
PB: predicated region body
PF: predicated region fallthrough
CT: control target
= control target key end

     0   :  { %s1162_s0 = inlined_call_operand.vmem [shape: bf16[32,256], index: 0, kind: input, shape index: {}]   ;;  %s1163_s1 = inlined_call_operand.vmem [shape: bf16[128,32], index: 1, kind: input, shape index: {}]   ;;  %s1164_s2 = inlined_call_operand.vmem [shape: f32[128,1], index: 2, kind: input, shape index: {}]   ;;  %s1165_s3 = inlined_call_operand.vmem [shape: bf16[8,128], index: 3, kind: input, shape index: {}]   ;;  %s1166_s4 = inlined_call_operand.<no memory space> [shape: f32[1], index: 4, kind: input, shape index: {}]   ;;  %s1167_s5 = inlined_call_operand.hbm [shape: f32[1,256], index: 5, kind: output, shape index: {}]  }
   0x1   :  { %10 = sst [smem:[#allocation2]] %s1166_s4 }
   0x2   :  { %11 = vsyncpa [#allocation5], 0 }
   0x3   :  { %13 = vsyncpa [#allocation5 + $0x1], 0  ;;  %s952_s20 = smov 0   ;;  %s954_s21 = smov 0  }
   0x4   :  { %s956_s22 = smov 0   ;;  %s958_s23 = smov 0  }
   0x5 LB: > { %s711_s4 = sadd.s32 4294967295, %s913_s23   ;;  %s712_s24 = sadd.s32 4294967294, %s913_s23   ;;  %s913_s23 = sphi %s958_s23, %s1173_s23   ;;  %s909_s22 = sphi %s956_s22, %s1172_s22   ;;  %s905_s21 = sphi %s954_s21, %s1171_s21   ;;  %s901_s20 = sphi %s952_s20, %s1170_s20  }
   0x6   : > { %s975_s25 = sadd.s32 1, %s913_s23   ;;  %s26_s26 = sadd.s32 1, %s909_s22 }
   0x7   : > { %s23_s27 = ssub.s32 %s913_s23, %s975_s25  ;;  %p33_p0 = scmp.ne.s32.totalorder %s909_s22, %s905_s21 }
   0x8   : > { %p24_p1 = scmp.eq.s32.totalorder %s23_s27, 0  ;;  %p34_p2 = scmp.eq.s32.totalorder %s913_s23, 0 }
   0x9   : > { %p147_p3 = scmp.eq.s32.totalorder %s711_s4, 1  ;;  %p152_p4 = scmp.ne.s32.totalorder %s905_s21, %s901_s20 }
   0xa   : > { %s988_s28 = scalar_select %p24_p1, %s909_s22, %s26_s26  }
   0xb   : > { %p35_p5 = por %p34_p2, %p33_p0  ;;  %p990_p6 = por %p147_p3, %p33_p0 }
   0xc   : > { %p153_p7 = scmp.eq.s32.totalorder %s712_s24, 1  ;;  %p714_p9 = scmp.ge.s32.totalorder %s913_s23, 2 }
   0xe   : > { %p994_p8 = por %p153_p7, %p152_p4  ;;  %181 = sbr.rel (%p714_p9) target bundleno = 25 (0x19), region = 32 }
  0x13   : > { %184 = sbr.rel (!%p35_p5) target bundleno = 25 (0x19), region = 36  ;;  %s186_s6 = sand.u32 (%p35_p5), 1, %s909_s22  }
  0x14   : > { %s716_s7 = sshll.u32 (%p35_p5), %s913_s23, 2  ;;  %s715_s8 = sshll.u32 (%p35_p5), %s186_s6, 4 }
  0x15   : > { %s190_s11 = scalar_lea.vmem (%p35_p5), %s1162_s0, %s716_s7  ;;  %s188_s12 = scalar_lea.vmem (%p35_p5), [#allocation3], %s715_s8 }
  0x16   : > { %v207_v0 = vld [vmem:[%s190_s11] sm:$0xf] (%p35_p5)  ;;  %v209_v1 = vld [vmem:[%s190_s11 + $0x8] sm:$0xf] (%p35_p5)  ;;  %v211_v2 = vld [vmem:[%s190_s11 + $0x10] sm:$0xf] (%p35_p5) }
  0x17   : > { %208 = vst [vmem:[%s188_s12] sm:$0xf] (%p35_p5), %v207_v0  ;;  %210 = vst [vmem:[%s188_s12 + $0x4] sm:$0xf] (%p35_p5), %v209_v1  ;;  %v213_v3 = vld [vmem:[%s190_s11 + $0x18] sm:$0xf] (%p35_p5) }
  0x18   : > { %212 = vst [vmem:[%s188_s12 + $0x8] sm:$0xf] %v211_v2  ;;  %214 = vst [vmem:[%s188_s12 + $0xc] sm:$0xf] %v213_v3 }
  0x19 PF: > { %p717_p10 = scmp.ge.s32.totalorder %s913_s23, 1  ;;  %p245_p11 = scmp.lt.s32.totalorder %s913_s23, 3 }
  0x1b   : > { %p246_p12 = pnand %p717_p10, %p245_p11 }
  0x1c   : > { %s1009_s13 = sand.u32 (!%p246_p12), 1, %s905_s21   ;;  %s634_s18 = sld [smem:[#allocation2]] (!%p246_p12) }
  0x1d   : > { %249 = sbr.rel (%p246_p12) target bundleno = 511 (0x1ff), region = 77  ;;  %s718_s16 = sshll.u32 (!%p246_p12), %s1009_s13, 4 }
  0x1e   : > { %s254_s17 = scalar_lea.vmem (!%p246_p12), [#allocation3], %s718_s16  ;;  %s737_s19 = sshll.u32 (!%p246_p12), %s711_s4, 4 }
  0x1f   : > { %s277_s24 = scalar_lea.vmem (!%p246_p12), [#allocation4], %s1009_s13  ;;  %s1119_s7 = scalar_lea.hbm (!%p246_p12), %s1167_s5, %s737_s19 }
  0x20   : > { %s651_s26 = sshll.u32 (!%p246_p12), %s277_s24, 4  ;;  %s639_s8 = scalar_lea.sflag (!%p246_p12), [#allocation5], %s1009_s13  ;;  %s1121_s26 = int_to_ptr.vmem [resolvable:$true] %s651_s26 }
  0x21   : > { %s853_s9 = scalar_lea.vmem (!%p246_p12), %s1121_s26, 16  ;;  %s918_s4 = smov (!%p246_p12), [#allocation4]  }
  0x22   : > { %v845_v4 = vld [vmem:[%s1163_s1] sm:$0xff]   ;;  %vm447_vm0 = vcmask 261120   ;;  %v843_v5 = vld [vmem:[%s254_s17 + $0x8] sm:$0xff]   ;;  %v915_v7 = vmov 0   ;;  %v847_v9 = vld [vmem:[%s1163_s1 + $0x10] sm:$0xff]   ;;  %v916_v31 = vmov 0.0   ;;  %p854_p13 = scmp.ne.s32.totalorder %s1121_s26, %s853_s9 }
  0x23   : > { %763 = vmatprep.mubr.msk.bf16.mxu0 %vm447_vm0, %v845_v4  ;;  %v844_v6 = vld [vmem:[%s254_s17] sm:$0xff]   ;;  %841 = vset.pattern.permute.xlu0 %v915_v7  ;;  %v846_v8 = vld [vmem:[%s1163_s1 + $0x8] sm:$0xff]   ;;  %v314_v12 = vld [vmem:[%s1164_s2 + $0x78] sm:$0xff]  ;;  %vm917_vm1 = vmmov 0   ;;  %s857_s10 = sshll.u32 %s918_s4, 4  ;;  %s858_s10 = int_to_ptr.vmem [resolvable:$false] %s857_s10 }
  0x24   : > { %842 = vset.pattern.permute.xlu1 %v915_v7  ;;  %759 = vmatprep.subr.bf16.mxu0 %v843_v5  ;;  %v313_v10 = vld [vmem:[%s1164_s2 + $0x70] sm:$0xff]  ;;  %v311_v11 = vld [vmem:[%s1164_s2 + $0x60] sm:$0xff]  ;;  %v312_v13 = vld [vmem:[%s1164_s2 + $0x68] sm:$0xff]  ;;  %p855_p0 = pnand %p854_p13, %p990_p6  ;;  %s859_s11 = scalar_lea.vmem %s858_s10, 32 }
  0x25   : > { %760 = vmatpush3.bf16.msra.mxu0 %v843_v5  ;;  %387 = vperm.xlu0 %841, %v313_v10   ;;  %v309_v14 = vld [vmem:[%s1164_s2 + $0x50] sm:$0xff]  ;;  %v848_v15 = vld [vmem:[%s1163_s1 + $0x18] sm:$0xff]   ;;  %v849_v17 = vld [vmem:[%s1163_s1 + $0x20] sm:$0xff]   ;;  %p860_p2 = scmp.lt.s32.totalorder %s1121_s26, %s858_s10  ;;  %p861_p3 = scmp.lt.s32.totalorder %s859_s11, %s853_s9 }
  0x26   : > { %761 = vmatprep.subr.bf16.mxu0 %v844_v6  ;;  %377 = vperm.xlu1 %842, %v311_v11   ;;  %v310_v16 = vld [vmem:[%s1164_s2 + $0x58] sm:$0xff]  ;;  %v307_v18 = vld [vmem:[%s1164_s2 + $0x40] sm:$0xff]  ;;  %v308_v19 = vld [vmem:[%s1164_s2 + $0x48] sm:$0xff]  ;;  %p856_p1 = pneg %p855_p0 }
  0x27   : > { %v305_v20 = vld [vmem:[%s1164_s2 + $0x30] sm:$0xff]  ;;  %v850_v21 = vld [vmem:[%s1163_s1 + $0x28] sm:$0xff]   ;;  %v306_v22 = vld [vmem:[%s1164_s2 + $0x38] sm:$0xff]  ;;  %779 = vmatprep.subr.bf16.mxu1 %v916_v31  ;;  %795 = vmatprep.mubr.msk.bf16.mxu1 %vm917_vm1, %v916_v31  ;;  %p862_p4 = por %p861_p3, %p860_p2 }
  0x28   : > { %v851_v23 = vld [vmem:[%s1163_s1 + $0x30] sm:$0xff]   ;;  %v303_v24 = vld [vmem:[%s1164_s2 + $0x20] sm:$0xff]  ;;  %v304_v25 = vld [vmem:[%s1164_s2 + $0x28] sm:$0xff] }
  0x29   : > { %762 = vmatpush3.bf16.msra.mxu0 %v844_v6  ;;  %392 = vperm.xlu0 %841, %v314_v12   ;;  %v301_v26 = vld [vmem:[%s1164_s2 + $0x10] sm:$0xff]  ;;  %v852_v27 = vld [vmem:[%s1163_s1 + $0x38] sm:$0xff]   ;;  %v299_v29 = vld [vmem:[%s1164_s2] sm:$0xff]  ;;  %p863_p5 = pnand %p862_p4, %p856_p1 }
  0x2a   : > { %382 = vperm.xlu1 %842, %v312_v13   ;;  %v302_v28 = vld [vmem:[%s1164_s2 + $0x18] sm:$0xff]  ;;  %v300_v30 = vld [vmem:[%s1164_s2 + $0x8] sm:$0xff] }
  0x2c   : > { %764 = vmatmul.mubr.msk.bf16.vlgmr.msra.gmra.mxu0 %vm447_vm0, %v846_v8 }
  0x2d   : > { %767 = vmatprep.mubr.msk.bf16.mxu0 %vm447_vm0, %v847_v9  ;;  %367 = vperm.xlu0 %841, %v309_v14  }
  0x2e   : > { %372 = vperm.xlu1 %842, %v310_v16  }
  0x31   : > { %357 = vperm.xlu0 %841, %v307_v18  }
  0x32   : > { %362 = vperm.xlu1 %842, %v308_v19  }
  0x34   : > { %768 = vmatmul.mubr.msk.bf16.gmra.mxu0 %vm447_vm0, %v848_v15 }
  0x35   : > { %771 = vmatprep.mubr.msk.bf16.mxu0 %vm447_vm0, %v849_v17  ;;  %347 = vperm.xlu0 %841, %v305_v20  }
  0x36   : > { %352 = vperm.xlu1 %842, %v306_v22  }
  0x39   : > { %337 = vperm.xlu0 %841, %v303_v24  }
  0x3a   : > { %342 = vperm.xlu1 %842, %v304_v25  }
  0x3c   : > { %772 = vmatmul.mubr.msk.bf16.gmra.mxu0 %vm447_vm0, %v850_v21 }
  0x3d   : > { %775 = vmatprep.mubr.msk.bf16.mxu0 %vm447_vm0, %v851_v23  ;;  %327 = vperm.xlu0 %841, %v301_v26  }
  0x3e   : > { %332 = vperm.xlu1 %842, %v302_v28  }
  0x41   : > { %317 = vperm.xlu0 %841, %v299_v29  }
  0x42   : > { %322 = vperm.xlu1 %842, %v300_v30  }
  0x44   : > { %776 = vmatmul.mubr.msk.bf16.gmra.mxu0 %vm447_vm0, %v852_v27 }
  0xa0   : > { %v388_v38 = vpop.permute.xlu0 %387 }
  0xa1   : > { %v378_v36 = vpop.permute.xlu1 %377 }
  0xa4   : > { %v393_v43 = vpop.permute.xlu0 %392 }
  0xa5   : > { %v383_v41 = vpop.permute.xlu1 %382 }
  0xa8   : > { %v368_v48 = vpop.permute.xlu0 %367 }
  0xa9   : > { %v373_v46 = vpop.permute.xlu1 %372 }
  0xac   : > { %v358_v54 = vpop.permute.xlu0 %357 }
  0xad   : > { %v363_v51 = vpop.permute.xlu1 %362 }
  0xb0   : > { %v348_v2 = vpop.permute.xlu0 %347 }
  0xb1   : > { %v353_v62 = vpop.permute.xlu1 %352 }
  0xb4   : > { %v338_v11 = vpop.permute.xlu0 %337 }
  0xb5   : > { %v343_v8 = vpop.permute.xlu1 %342 }
  0xb8   : > { %v328_v21 = vpop.permute.xlu0 %327 }
  0xb9   : > { %v333_v17 = vpop.permute.xlu1 %332 }
  0xbc   : > { %v318_v30 = vpop.permute.xlu0 %317 }
  0xbd   : > { %v323_v27 = vpop.permute.xlu1 %322 }
  0xec   : > { %v1094_v32 = vpop.f32.mrf.mxu0 }
  0xed   : > { %v515_v28 = vadd.f32 %v1094_v32, %v328_v21 }
  0xee   : > { %v1096_v33 = vpop.f32.mrf.mxu0 }
  0xf0   : > { %v766_v34 = vpop.f32.mrf.mxu0 }
  0xf1   : > { %v518_v24 = vadd.f32 %v766_v34, %v333_v17 }
  0xf2   : > { %v1098_v35 = vpop.f32.mrf.mxu0 }
  0xf4   : > { %v769_v37 = vpop.f32.mrf.mxu0 }
  0xf5   : > { %v531_v15 = vadd.f32 %v769_v37, %v348_v2  ;;  %v510_v37 = vadd.f32 %v1098_v35, %v323_v27  ;;  %v585_v35 = vld [vmem:[%s1165_s3] sm:$0xf] }
  0xf6   : > { %v522_v39 = vpop.f32.mrf.mxu0 }
  0xf7   : > { %v575_v22 = vmax.f32 %v531_v15, 0.0  ;;  %v523_v23 = vadd.f32 %v522_v39, %v338_v11  ;;  %v571_v39 = vmax.f32 %v515_v28, 0.0 }
  0xf8   : > { %v770_v40 = vpop.f32.mrf.mxu0 }
  0xf9   : > { %v534_v12 = vadd.f32 %v770_v40, %v353_v62  ;;  %v573_v29 = vmax.f32 %v523_v23, 0.0  ;;  %v507_v40 = vadd.f32 %v1096_v33, %v318_v30  ;;  %v635_v33 = vstv %s634_s18 }
  0xfa   : > { %v525_v42 = vpop.f32.mrf.mxu0 }
  0xfb   : > { %v576_v18 = vmax.f32 %v534_v12, 0.0  ;;  %v526_v19 = vadd.f32 %v525_v42, %v343_v8  ;;  %v569_v32 = vmax.f32 %v507_v40, 0.0 }
  0xfc   : > { %v773_v44 = vpop.f32.mrf.mxu0 }
  0xfd   : > { %v547_v3 = vadd.f32 %v773_v44, %v368_v48  ;;  %v589_v25 = vpack.c.bf16 %v576_v18, %v575_v22  ;;  %v574_v26 = vmax.f32 %v526_v19, 0.0 }
  0xfe   : > { %v538_v45 = vpop.f32.mrf.mxu0 }
  0xff   : > { %v579_v9 = vmax.f32 %v547_v3, 0.0  ;;  %v539_v10 = vadd.f32 %v538_v45, %v358_v54 }
 0x100   : > { %v774_v47 = vpop.f32.mrf.mxu0 }
 0x101   : > { %v550_v63 = vadd.f32 %v774_v47, %v373_v46  ;;  %v577_v16 = vmax.f32 %v539_v10, 0.0 }
 0x102   : > { %v541_v49 = vpop.f32.mrf.mxu0 }
 0x103   : > { %v580_v5 = vmax.f32 %v550_v63, 0.0  ;;  %v542_v6 = vadd.f32 %v541_v49, %v363_v51 }
 0x104   : > { %v777_v50 = vpop.f32.mrf.mxu0 }
 0x105   : > { %v563_v53 = vadd.f32 %v777_v50, %v388_v38  ;;  %v591_v13 = vpack.c.bf16 %v580_v5, %v579_v9  ;;  %v578_v14 = vmax.f32 %v542_v6, 0.0  ;;  %v588_v38 = vpack.c.bf16 %v574_v26, %v573_v29 }
 0x106   : > { %v554_v52 = vpop.f32.mrf.mxu0 }
 0x107   : > { %v583_v58 = vmax.f32 %v563_v53, 0.0  ;;  %v555_v59 = vadd.f32 %v554_v52, %v378_v36  ;;  %v590_v20 = vpack.c.bf16 %v578_v14, %v577_v16  ;;  %v572_v36 = vmax.f32 %v518_v24, 0.0 }
 0x108   : > { %v778_v55 = vpop.f32.mrf.mxu0 }
 0x109   : > { %v566_v56 = vadd.f32 %v778_v55, %v393_v43  ;;  %v581_v4 = vmax.f32 %v555_v59, 0.0  ;;  %v587_v34 = vpack.c.bf16 %v572_v36, %v571_v39 }
 0x10a   : > { %v557_v57 = vpop.f32.mrf.mxu0 }
 0x10b   : > { %v584_v60 = vmax.f32 %v566_v56, 0.0  ;;  %v558_v61 = vadd.f32 %v557_v57, %v383_v41  ;;  %v570_v41 = vmax.f32 %v510_v37, 0.0 }
 0x10d   : > { %v582_v0 = vmax.f32 %v558_v61, 0.0  ;;  %v593_v1 = vpack.c.bf16 %v584_v60, %v583_v58  ;;  %v586_v42 = vpack.c.bf16 %v570_v41, %v569_v32 }
 0x10f   : > { %780 = vmatpush3.bf16.msra.mxu1 %v593_v1  ;;  %v592_v7 = vpack.c.bf16 %v582_v0, %v581_v4 }
 0x110   : > { %781 = vmatprep.subr.bf16.mxu1 %v916_v31 }
 0x113   : > { %782 = vmatpush3.bf16.msra.mxu1 %v592_v7 }
 0x114   : > { %783 = vmatprep.subr.bf16.mxu1 %v916_v31 }
 0x117   : > { %784 = vmatpush3.bf16.msra.mxu1 %v591_v13 }
 0x118   : > { %785 = vmatprep.subr.bf16.mxu1 %v916_v31 }
 0x11b   : > { %786 = vmatpush3.bf16.msra.mxu1 %v590_v20 }
 0x11c   : > { %787 = vmatprep.subr.bf16.mxu1 %v916_v31 }
 0x11f   : > { %788 = vmatpush3.bf16.msra.mxu1 %v589_v25 }
 0x120   : > { %789 = vmatprep.subr.bf16.mxu1 %v916_v31 }
 0x123   : > { %790 = vmatpush3.bf16.msra.mxu1 %v588_v38 }
 0x124   : > { %791 = vmatprep.subr.bf16.mxu1 %v916_v31 }
 0x127   : > { %792 = vmatpush3.bf16.msra.mxu1 %v587_v34 }
 0x128   : > { %793 = vmatprep.subr.bf16.mxu1 %v916_v31 }
 0x12b   : > { %794 = vmatpush3.bf16.msra.mxu1 %v586_v42 }
 0x12e   : > { %796 = vmatmul.mubr.bf16.vlgmr.msra.gmra.mxu1 %v585_v35 }
 0x1ee   : > { %v628_v43 = vpop.f32.mrf.mxu1 }
 0x1ef   : > { %v636_v44 = vadd.f32 %v635_v33, %v628_v43 }
 0x1f0   : > { %v797_v31 = vpop.f32.mrf.mxu1 }
 0x1f1   : > { %637 = vst [vmem:[%s277_s24] sm:$0x1] %v636_v44 }
 0x1f2   : > { %v631_v45 = vpop.f32.mrf.mxu1 }
 0x1f3   : > { %866 = shalt.err (!%p863_p5)
}
 0x1f4   : > { %s867_s12 = scalar_lea.hbm %s1119_s7, 16  ;;  %s871_s15 = scalar_lea.hbm %s1167_s5, 32 }
 0x1f5   : > { %p868_p7 = scmp.ne.s32.totalorder %s1119_s7, %s867_s12  ;;  %p872_p12 = scmp.lt.s32.totalorder %s1119_s7, %s1167_s5 }
 0x1f6   : > { %p873_p13 = scmp.lt.s32.totalorder %s871_s15, %s867_s12 }
 0x1f7   : > { %p869_p10 = pnand %p868_p7, %p990_p6 }
 0x1f8   : > { %p874_p0 = por %p873_p13, %p872_p12 }
 0x1f9   : > { %p870_p11 = pneg %p869_p10 }
 0x1fb   : > { %p875_p1 = pnand %p874_p0, %p870_p11 }
 0x1fd   : > { %878 = shalt.err (!%p875_p1)
}
 0x1fe   : > { %799 = dma.vmem_to_hbm [thread:$0]  (%p990_p6), %s1121_s26, 16, %s1119_s7, %s639_s8   ;;  %v798_v46 = vpop.f32.mrf.mxu1 }
 0x1ff PF: > { %s663_s18 = sand.u32 1, %s901_s20   ;;  %p802_p2 = pnand %p714_p9, %p994_p8 }
 0x200   : > { %s664_s19 = scalar_lea.sflag [#allocation5], %s663_s18 }
 0x201   : > { %p803_p3 = pneg %p802_p2 }
 0x203   : > { %896 = dma.done.wait (%p803_p3), %s664_s19, 16  }
 0x204   : > { %898 = vsyncadd (%p803_p3), %s664_s19, 4294967280  ;;  %p16_p4 = scmp.ge.s32.totalorder %s975_s25, 4   ;;  %s1170_s20 = smov %s905_s21 }
 0x205   : > { %s1171_s21 = smov %s909_s22  ;;  %s1172_s22 = smov %s988_s28 }
 0x206   : > { %s1173_s23 = smov %s975_s25  ;;  %18 = sbr.rel (!%p16_p4) target bundleno = 5 (0x5), region = 121 }
 0x20b   :  { %668 = vsyncpa [#allocation5], 1 }
 0x20c   :  { %670 = vsyncpa [#allocation5 + $0x1], 1 }

</bundles_post_ra>
